<compile_context>
chip_gen: v6e
topology: v6e:2x2x1
jax: 0.10.0
libtpu: 0.0.40
codegen_flags: <defaults>
</compile_context>

<pallas_src>
import functools

import jax
import jax.numpy as jnp
import numpy as np
from jax.experimental import pallas as pl
from jax.experimental.pallas import tpu as pltpu


def attention_kernel(x_ref, wqkv_ref, wproj_ref, bproj_ref, o_ref, *,
                     num_heads: int, head_dim: int, mxu_dtype):
    # x_ref block: (1, N, D). Weights are full arrays resident in VMEM
    # (already cast to the MXU dtype host-side); bias is f32.
    inner = num_heads * head_dim

    x = x_ref[0].astype(mxu_dtype)                                  # (N, D)

    # QKV projection (no bias). The softmax scale is already folded into the
    # q-columns of wqkv, so no separate scale multiply is needed.
    qkv = jnp.dot(x, wqkv_ref[...],
                  preferred_element_type=jnp.float32)               # (N, 3*inner) f32

    # Gather per-head slabs into a leading-batch (H, N, hd) layout so the
    # attention contractions run as single batched MXU calls instead of an
    # unrolled chain of K=head_dim matmuls.
    def heads(base):
        return jnp.stack(
            [qkv[:, base + h * head_dim: base + (h + 1) * head_dim]
             for h in range(num_heads)],
            axis=0).astype(mxu_dtype)                               # (H, N, hd)

    q = heads(0)
    k = heads(inner)
    v = heads(2 * inner)

    # scores[h] = (q_scaled[h]) @ k[h]^T — batched over heads, transpose
    # handled by the contraction dims (no XLU transpose of k).
    scores = jnp.einsum('hqd,hkd->hqk', q, k,
                        preferred_element_type=jnp.float32)         # (H, N, N) f32

    # Numerically stable softmax, kept entirely in f32 (VPU/EUP path).
    m = jnp.max(scores, axis=-1, keepdims=True)
    p = jnp.exp(scores - m)
    attn = p * pl.reciprocal(jnp.sum(p, axis=-1, keepdims=True), approx=True)

    # ctx[h] = attn[h] @ v[h] — batched over heads.
    ctx = jnp.einsum('hqk,hkd->hqd', attn.astype(mxu_dtype), v,
                     preferred_element_type=jnp.float32)            # (H, N, hd)

    # Output projection with the head-merge folded in:
    #   out = sum_h ctx[h] @ Wproj[h]  (+ bias)
    # wproj_ref is (H, hd, D); avoids lane-axis concatenate and any relayout.
    out_h = jnp.einsum('hqd,hdk->hqk', ctx.astype(mxu_dtype), wproj_ref[...],
                       preferred_element_type=jnp.float32)          # (H, N, D)
    out = jnp.sum(out_h, axis=0) + bproj_ref[...]                   # (N, D) f32

    o_ref[0] = out.astype(o_ref.dtype)


def attention_forward(x, wqkv_t, wproj_t, bproj, *, num_heads: int,
                      head_dim: int, mxu_dtype=jnp.bfloat16):
    B, N, D = x.shape
    inner = num_heads * head_dim
    scale = float(head_dim) ** -0.5

    # Host-side parameter prep (free — hoisted out of the kernel):
    #  * fold the attention scale into the q-columns of the qkv weight,
    #  * cast weights to the MXU dtype (halves weight DMA traffic),
    #  * reshape the proj weight to (H, hd, D) for the per-head projection.
    col_scale = jnp.concatenate([
        jnp.full((inner,), scale, dtype=wqkv_t.dtype),
        jnp.ones((2 * inner,), dtype=wqkv_t.dtype),
    ])
    wqkv_p = (wqkv_t * col_scale[None, :]).astype(mxu_dtype)        # (D, 3*inner)
    wproj_p = wproj_t.reshape(num_heads, head_dim, D).astype(mxu_dtype)
    bproj_p = bproj.astype(jnp.float32)                             # (1, D)

    kernel = functools.partial(attention_kernel,
                               num_heads=num_heads,
                               head_dim=head_dim,
                               mxu_dtype=mxu_dtype)

    return pl.pallas_call(
        kernel,
        out_shape=jax.ShapeDtypeStruct((B, N, D), x.dtype),
        grid_spec=pltpu.PrefetchScalarGridSpec(
            num_scalar_prefetch=0,
            grid=(B,),
            in_specs=[
                pl.BlockSpec((1, N, D), lambda b: (b, 0, 0)),                 # x
                pl.BlockSpec((D, 3 * inner), lambda b: (0, 0)),               # wqkv (scaled, bf16)
                pl.BlockSpec((num_heads, head_dim, D), lambda b: (0, 0, 0)),  # wproj (H, hd, D)
                pl.BlockSpec((1, D), lambda b: (0, 0)),                       # bias
            ],
            out_specs=pl.BlockSpec((1, N, D), lambda b: (b, 0, 0)),
        ),
        compiler_params=pltpu.CompilerParams(
            dimension_semantics=("parallel",)),
    )(x, wqkv_p, wproj_p, bproj_p)


def reference_attention(x, wqkv_t, wproj_t, bproj, *, num_heads, head_dim):
    B, N, D = x.shape
    inner = num_heads * head_dim
    scale = float(head_dim) ** -0.5
    qkv = jnp.einsum('bnd,de->bne', x, wqkv_t)
    q, k, v = jnp.split(qkv, 3, axis=-1)

    def split_heads(t):
        return t.reshape(B, N, num_heads, head_dim).transpose(0, 2, 1, 3)

    q, k, v = map(split_heads, (q, k, v))
    scores = jnp.einsum('bhid,bhjd->bhij', q, k) * scale
    attn = jax.nn.softmax(scores, axis=-1)
    out = jnp.einsum('bhij,bhjd->bhid', attn, v)
    out = out.transpose(0, 2, 1, 3).reshape(B, N, inner)
    return jnp.einsum('bni,id->bnd', out, wproj_t) + bproj[0]


if __name__ == "__main__":
    # Small shapes consistent with the module: dim=32, head_dim=16, num_heads=2.
    B, N, D = 2, 8, 32
    num_heads, head_dim = 2, 16
    inner = num_heads * head_dim

    key = jax.random.PRNGKey(0)
    kx, kqkv, kproj, kb = jax.random.split(key, 4)

    x = jax.random.normal(kx, (B, N, D), dtype=jnp.float32)
    # Deterministic synthetic parameters (shapes match nn.Linear weights, transposed).
    wqkv_t = jax.random.normal(kqkv, (D, 3 * inner), dtype=jnp.float32) * (D ** -0.5)
    wproj_t = jax.random.normal(kproj, (inner, D), dtype=jnp.float32) * (inner ** -0.5)
    bproj = jax.random.normal(kb, (1, D), dtype=jnp.float32) * 0.02

    out = attention_forward(x, wqkv_t, wproj_t, bproj,
                            num_heads=num_heads, head_dim=head_dim)
    out = jax.block_until_ready(out)

    ref = reference_attention(x, wqkv_t, wproj_t, bproj,
                              num_heads=num_heads, head_dim=head_dim)
    # bf16 MXU operands with f32 accumulation + f32 softmax -> loosened tolerance.
    np.testing.assert_allclose(np.asarray(out), np.asarray(ref),
                               rtol=5e-2, atol=5e-2)
    print("KERNEL_OK")
</pallas_src>

<mosaic_0001>
module attributes {stable_mosaic.version = 11 : i64} {
  func.func @attention_kernel(%arg0: i32, %arg1: memref<1x8x32xf32, #tpu.memory_space<vmem>>, %arg2: memref<32x96xbf16, #tpu.memory_space<vmem>>, %arg3: memref<2x16x32xbf16, #tpu.memory_space<vmem>>, %arg4: memref<1x32xf32, #tpu.memory_space<vmem>>, %arg5: memref<1x8x32xf32, #tpu.memory_space<vmem>>) attributes {dimension_semantics = [#tpu.dimension_semantics<parallel>], iteration_bounds = array<i64: 2>, scalar_prefetch = 0 : i64, scratch_operands = 0 : i64, tpu.core_type = #tpu.core_type<tc>, window_params = [{transform_indices = @transform_0, window_bounds = array<i64: 1, 8, 32>}, {pipeline_mode = #tpu.pipeline_mode<synchronous>, transform_indices = @transform_1, window_bounds = array<i64: 32, 96>}, {pipeline_mode = #tpu.pipeline_mode<synchronous>, transform_indices = @transform_2, window_bounds = array<i64: 2, 16, 32>}, {pipeline_mode = #tpu.pipeline_mode<synchronous>, transform_indices = @transform_3, window_bounds = array<i64: 1, 32>}, {transform_indices = @transform_4, window_bounds = array<i64: 1, 8, 32>}]} {
    %c0 = arith.constant 0 : index
    %c0_0 = arith.constant 0 : index
    %c0_1 = arith.constant 0 : index
    %0 = vector.load %arg1[%c0, %c0_0, %c0_1] : memref<1x8x32xf32, #tpu.memory_space<vmem>>, vector<1x8x32xf32>
    %1 = vector.shape_cast %0 : vector<1x8x32xf32> to vector<8x32xf32>
    %2 = arith.truncf %1 : vector<8x32xf32> to vector<8x32xbf16>
    %c0_2 = arith.constant 0 : index
    %c0_3 = arith.constant 0 : index
    %3 = vector.load %arg2[%c0_2, %c0_3] : memref<32x96xbf16, #tpu.memory_space<vmem>>, vector<32x96xbf16>
    %cst = arith.constant dense<0.000000e+00> : vector<8x96xf32>
    %4 = tpu.matmul %2, %3, %cst {dimension_numbers = #tpu.dot_dimension_numbers<[1], [0], [0], [1], [0, 0, 1, 1], [], []>} : vector<8x32xbf16>, vector<32x96xbf16>, vector<8x96xf32> -> vector<8x96xf32>
    %5 = vector.extract_strided_slice %4 {offsets = [0, 0], sizes = [8, 16], strides = [1, 1]} : vector<8x96xf32> to vector<8x16xf32>
    %6 = vector.extract_strided_slice %4 {offsets = [0, 16], sizes = [8, 16], strides = [1, 1]} : vector<8x96xf32> to vector<8x16xf32>
    %7 = vector.shape_cast %5 : vector<8x16xf32> to vector<1x8x16xf32>
    %8 = vector.shape_cast %6 : vector<8x16xf32> to vector<1x8x16xf32>
    %9 = tpu.concatenate %7, %8 in 0 : vector<1x8x16xf32>, vector<1x8x16xf32> -> vector<2x8x16xf32>
    %10 = arith.truncf %9 : vector<2x8x16xf32> to vector<2x8x16xbf16>
    %11 = vector.extract_strided_slice %4 {offsets = [0, 32], sizes = [8, 16], strides = [1, 1]} : vector<8x96xf32> to vector<8x16xf32>
    %12 = vector.extract_strided_slice %4 {offsets = [0, 48], sizes = [8, 16], strides = [1, 1]} : vector<8x96xf32> to vector<8x16xf32>
    %13 = vector.shape_cast %11 : vector<8x16xf32> to vector<1x8x16xf32>
    %14 = vector.shape_cast %12 : vector<8x16xf32> to vector<1x8x16xf32>
    %15 = tpu.concatenate %13, %14 in 0 : vector<1x8x16xf32>, vector<1x8x16xf32> -> vector<2x8x16xf32>
    %16 = arith.truncf %15 : vector<2x8x16xf32> to vector<2x8x16xbf16>
    %17 = vector.extract_strided_slice %4 {offsets = [0, 64], sizes = [8, 16], strides = [1, 1]} : vector<8x96xf32> to vector<8x16xf32>
    %18 = vector.extract_strided_slice %4 {offsets = [0, 80], sizes = [8, 16], strides = [1, 1]} : vector<8x96xf32> to vector<8x16xf32>
    %19 = vector.shape_cast %17 : vector<8x16xf32> to vector<1x8x16xf32>
    %20 = vector.shape_cast %18 : vector<8x16xf32> to vector<1x8x16xf32>
    %21 = tpu.concatenate %19, %20 in 0 : vector<1x8x16xf32>, vector<1x8x16xf32> -> vector<2x8x16xf32>
    %22 = arith.truncf %21 : vector<2x8x16xf32> to vector<2x8x16xbf16>
    "tpu.trace_start"() <{level = 10 : i32, message = "hqd,hkd->hqk"}> : () -> ()
    %cst_4 = arith.constant dense<0.000000e+00> : vector<2x8x8xf32>
    %23 = tpu.matmul %10, %16, %cst_4 {dimension_numbers = #tpu.dot_dimension_numbers<[2], [2], [1], [1], [0, 0, 0, 1, 1, 1], [0], [0]>} : vector<2x8x16xbf16>, vector<2x8x16xbf16>, vector<2x8x8xf32> -> vector<2x8x8xf32>
    "tpu.trace_stop"() : () -> ()
    %cst_5 = arith.constant dense<0xFF800000> : vector<2x8xf32>
    %24 = vector.multi_reduction <maximumf>, %23, %cst_5 [2] : vector<2x8x8xf32> to vector<2x8xf32>
    %25 = vector.shape_cast %24 : vector<2x8xf32> to vector<2x8x1xf32>
    %26 = vector.broadcast %25 : vector<2x8x1xf32> to vector<2x8x8xf32>
    %27 = arith.subf %23, %26 : vector<2x8x8xf32>
    %28 = math.exp %27 : vector<2x8x8xf32>
    %cst_6 = arith.constant dense<0.000000e+00> : vector<2x8xf32>
    %29 = vector.multi_reduction <add>, %28, %cst_6 [2] : vector<2x8x8xf32> to vector<2x8xf32>
    %30 = vector.shape_cast %29 : vector<2x8xf32> to vector<2x8x1xf32>
    %31 = tpu.reciprocal %30 {approx = true} : vector<2x8x1xf32> -> vector<2x8x1xf32>
    %32 = vector.broadcast %31 : vector<2x8x1xf32> to vector<2x8x8xf32>
    %33 = arith.mulf %28, %32 : vector<2x8x8xf32>
    %34 = arith.truncf %33 : vector<2x8x8xf32> to vector<2x8x8xbf16>
    "tpu.trace_start"() <{level = 10 : i32, message = "hqk,hkd->hqd"}> : () -> ()
    %cst_7 = arith.constant dense<0.000000e+00> : vector<2x8x16xf32>
    %35 = tpu.matmul %34, %22, %cst_7 {dimension_numbers = #tpu.dot_dimension_numbers<[2], [1], [1], [2], [0, 0, 0, 1, 1, 2], [0], [0]>} : vector<2x8x8xbf16>, vector<2x8x16xbf16>, vector<2x8x16xf32> -> vector<2x8x16xf32>
    "tpu.trace_stop"() : () -> ()
    %36 = arith.truncf %35 : vector<2x8x16xf32> to vector<2x8x16xbf16>
    %c0_8 = arith.constant 0 : index
    %c0_9 = arith.constant 0 : index
    %c0_10 = arith.constant 0 : index
    %37 = vector.load %arg3[%c0_8, %c0_9, %c0_10] : memref<2x16x32xbf16, #tpu.memory_space<vmem>>, vector<2x16x32xbf16>
    "tpu.trace_start"() <{level = 10 : i32, message = "hqd,hdk->hqk"}> : () -> ()
    %cst_11 = arith.constant dense<0.000000e+00> : vector<2x8x32xf32>
    %38 = tpu.matmul %36, %37, %cst_11 {dimension_numbers = #tpu.dot_dimension_numbers<[2], [1], [1], [2], [0, 0, 0, 1, 1, 2], [0], [0]>} : vector<2x8x16xbf16>, vector<2x16x32xbf16>, vector<2x8x32xf32> -> vector<2x8x32xf32>
    "tpu.trace_stop"() : () -> ()
    %cst_12 = arith.constant dense<0.000000e+00> : vector<8x32xf32>
    %39 = vector.multi_reduction <add>, %38, %cst_12 [0] : vector<2x8x32xf32> to vector<8x32xf32>
    %c0_13 = arith.constant 0 : index
    %c0_14 = arith.constant 0 : index
    %40 = vector.load %arg4[%c0_13, %c0_14] : memref<1x32xf32, #tpu.memory_space<vmem>>, vector<1x32xf32>
    %41 = vector.broadcast %40 : vector<1x32xf32> to vector<8x32xf32>
    %42 = arith.addf %39, %41 : vector<8x32xf32>
    %c0_15 = arith.constant 0 : index
    %c0_16 = arith.constant 0 : index
    %c0_17 = arith.constant 0 : index
    %43 = vector.load %arg5[%c0_15, %c0_16, %c0_17] : memref<1x8x32xf32, #tpu.memory_space<vmem>>, vector<1x8x32xf32>
    %44 = vector.shape_cast %43 : vector<1x8x32xf32> to vector<8x32xf32>
    %45 = vector.shape_cast %42 : vector<8x32xf32> to vector<1x8x32xf32>
    tpu.vector_store %arg5[%c0_15, %c0_16, %c0_17], %45 {strides = array<i32>} : memref<1x8x32xf32, #tpu.memory_space<vmem>>, vector<1x8x32xf32>,
    return
  }
  func.func @transform_0(%arg0: i32) -> (i32, i32, i32) {
    %c0_i32 = arith.constant 0 : i32
    %c0_i32_0 = arith.constant 0 : i32
    %c0_i32_1 = arith.constant 0 : i32
    return %arg0, %c0_i32, %c0_i32_0 : i32, i32, i32
  }
  func.func @transform_1(%arg0: i32) -> (i32, i32) {
    %c0_i32 = arith.constant 0 : i32
    %c0_i32_0 = arith.constant 0 : i32
    %c0_i32_1 = arith.constant 0 : i32
    return %c0_i32, %c0_i32_0 : i32, i32
  }
  func.func @transform_2(%arg0: i32) -> (i32, i32, i32) {
    %c0_i32 = arith.constant 0 : i32
    %c0_i32_0 = arith.constant 0 : i32
    %c0_i32_1 = arith.constant 0 : i32
    %c0_i32_2 = arith.constant 0 : i32
    return %c0_i32, %c0_i32_0, %c0_i32_1 : i32, i32, i32
  }
  func.func @transform_3(%arg0: i32) -> (i32, i32) {
    %c0_i32 = arith.constant 0 : i32
    %c0_i32_0 = arith.constant 0 : i32
    %c0_i32_1 = arith.constant 0 : i32
    return %c0_i32, %c0_i32_0 : i32, i32
  }
  func.func @transform_4(%arg0: i32) -> (i32, i32, i32) {
    %c0_i32 = arith.constant 0 : i32
    %c0_i32_0 = arith.constant 0 : i32
    %c0_i32_1 = arith.constant 0 : i32
    return %arg0, %c0_i32, %c0_i32_0 : i32, i32, i32
  }
}

</mosaic_0001>

<bundles_post_ra>
// kernel: tpu_custom_call.1
= control target key start
LH: loop header
LB: loop body
LE: loop exit
PB: predicated region body
PF: predicated region fallthrough
CT: control target
= control target key end

     0   :  { %9 = vsyncpa [#allocation3], 0  ;;  %s1326_s0 = inlined_call_operand.hbm [shape: f32[2,8,32], index: 0, kind: input, shape index: {}]   ;;  %s1327_s1 = inlined_call_operand.hbm [shape: bf16[32,96], index: 1, kind: input, shape index: {}]   ;;  %s1328_s2 = inlined_call_operand.hbm [shape: bf16[2,16,32], index: 2, kind: input, shape index: {}]   ;;  %s1329_s3 = inlined_call_operand.vmem [shape: f32[1,32], index: 3, kind: input, shape index: {}]   ;;  %s1330_s4 = inlined_call_operand.hbm [shape: f32[2,8,32], index: 4, kind: output, shape index: {}]  }
   0x1   :  { %11 = vsyncpa [#allocation3 + $0x1], 0 }
   0x2   :  { %12 = vsyncpa [#allocation6], 0 }
   0x3   :  { %13 = vsyncpa [#allocation4], 0 }
   0x4   :  { %15 = vsyncpa [#allocation4 + $0x1], 0  ;;  %s1110_s15 = smov 0   ;;  %s1112_s16 = smov 0  }
   0x5   :  { %s1114_s17 = smov 0   ;;  %s1116_s18 = smov 0  }
   0x6 LB: > { %s1131_s19 = sadd.s32 4294967295, %s1072_s18   ;;  %s751_s20 = sadd.s32 4294967294, %s1072_s18   ;;  %s1072_s18 = sphi %s1116_s18, %s1352_s18   ;;  %s1068_s17 = sphi %s1114_s17, %s1351_s17   ;;  %s1064_s16 = sphi %s1112_s16, %s1350_s16   ;;  %s1060_s15 = sphi %s1110_s15, %s1349_s15  }
   0x7   : > { %p41_p0 = scmp.ne.s32.totalorder %s1064_s16, %s1060_s15  ;;  %p1331_p1 = scmp.eq.s32.totalorder %s1131_s19, 0 }
   0x8   : > { %p134_p3 = scmp.eq.s32.totalorder %s751_s20, 1  ;;  %p752_p5 = scmp.ge.s32.totalorder %s1072_s18, 1 }
   0x9   : > { %p1140_p4 = por %p1331_p1, %p41_p0  ;;  %p141_p7 = scmp.lt.s32.totalorder %s1072_s18, 3 }
   0xa   : > { %p1145_p6 = por %p134_p3, %p41_p0  ;;  %s1074_s24 = smov [#allocation5]  }
   0xb   : > { %s1335_s21 = scalar_select %p1140_p4, 1, 0 }
   0xc   : > { %s1336_s22 = scalar_select %p1145_p6, 1, 0 }
   0xd   : > { %p1150_p8 = pnand %p752_p5, %p141_p7  ;;  %s153_s25 = sshll.u32 %s1074_s24, 4  ;;  %s154_s25 = int_to_ptr.vmem [resolvable:$true] %s153_s25 }
   0xe   : > { %s1075_s27 = smov [#allocation7]   ;;  %s935_s29 = scalar_lea.vmem %s154_s25, 256 }
   0xf   : > { %s1337_s23 = scalar_select %p1150_p8, 1, 0 }
  0x10   : > { %p850_p9 = pneg %p1150_p8  ;;  %s166_s28 = sshll.u32 %s1075_s27, 4  ;;  %s167_s28 = int_to_ptr.vmem [resolvable:$true] %s166_s28 }
  0x11   : > { %p936_p13 = scmp.ne.s32.totalorder %s154_s25, %s935_s29  ;;  %p943_p5 = scmp.lt.s32.totalorder %s154_s25, %s154_s25 }
  0x12   : > { %p1159_p11 = pnand %p850_p9, %p1331_p1  ;;  %p944_p7 = scmp.lt.s32.totalorder %s935_s29, %s935_s29 }
  0x14   : > { %p926_p12 = pneg %p1159_p11  ;;  %p945_p10 = por %p944_p7, %p943_p5 }
  0x16   : > { %p938_p0 = pnand %p936_p13, %p926_p12 }
  0x18   : > { %p939_p3 = pneg %p938_p0 }
  0x1a   : > { %p946_p9 = pnand %p945_p10, %p939_p3 }
  0x1c   : > { %949 = shalt.err (!%p946_p9)
}
  0x1d   : > { %s1076_s30 = smov 64   ;;  %s1077_s5 = smov 4  }
  0x1e   : > { %853 = dma.hbm_to_vmem [thread:$0]  (!%p1159_p11), %s1327_s1, 256, %s154_s25, [#allocation6], %s1076_s30, %s1076_s30, %s1077_s5  }
  0x1f   : > { %s961_s8 = scalar_lea.vmem %s167_s28, 256  ;;  %p969_p2 = scmp.lt.s32.totalorder %s167_s28, %s167_s28 }
  0x20   : > { %p962_p1 = scmp.ne.s32.totalorder %s167_s28, %s961_s8  ;;  %p970_p6 = scmp.lt.s32.totalorder %s961_s8, %s961_s8 }
  0x22   : > { %p964_p13 = pnand %p962_p1, %p926_p12  ;;  %p971_p5 = por %p970_p6, %p969_p2 }
  0x24   : > { %p965_p0 = pneg %p964_p13 }
  0x26   : > { %p972_p10 = pnand %p971_p5, %p965_p0 }
  0x28   : > { %975 = shalt.err (!%p972_p10)
}
  0x29   : > { %856 = dma.hbm_to_vmem [thread:$0]  (!%p1159_p11), %s1328_s2, 256, %s167_s28, [#allocation6], %s1076_s30, %s1076_s30, %s1077_s5  }
  0x2a   : > { %s1182_s11 = sadd.s32 1, %s1072_s18   ;;  %s28_s12 = sadd.s32 1, %s1068_s17 }
  0x2b   : > { %s25_s13 = ssub.s32 %s1072_s18, %s1182_s11  ;;  %p35_p1 = scmp.ne.s32.totalorder %s1068_s17, %s1064_s16 }
  0x2c   : > { %p26_p2 = scmp.eq.s32.totalorder %s25_s13, 0  ;;  %p36_p6 = scmp.eq.s32.totalorder %s1072_s18, 0 }
  0x2d   : > { %p1339_p12 = scmp.eq.s32.totalorder %s1131_s19, 1  ;;  %p867_p7 = scmp.lt.s32.totalorder %s1072_s18, 2 }
  0x2e   : > { %s1198_s20 = scalar_select %p26_p2, %s1068_s17, %s28_s12  }
  0x2f   : > { %p1192_p3 = por %p1339_p12, %p35_p1  ;;  %p37_p9 = por %p36_p6, %p35_p1 }
  0x30   : > { %s183_s24 = sand.u32 1, %s1068_s17   ;;  %s757_s26 = sshll.u32 %s1072_s18, 7 }
  0x31   : > { %s1340_s14 = scalar_select %p1192_p3, 1, 0 }
  0x32   : > { %s756_s25 = sshll.u32 %s183_s24, 3  ;;  %s1205_s29 = scalar_lea.hbm %s1326_s0, %s757_s26 }
  0x33   : > { %s187_s30 = scalar_lea.vmem [#allocation2], %s756_s25  ;;  %p1207_p11 = pnand %p867_p7, %p37_p9 }
  0x34   : > { %s194_s5 = sshll.u32 %s187_s30, 4  ;;  %s184_s7 = scalar_lea.sflag [#allocation3], %s183_s24  ;;  %s195_s5 = int_to_ptr.vmem [resolvable:$true] %s194_s5 }
  0x35   : > { %s976_s8 = scalar_lea.hbm %s1205_s29, 128  ;;  %p978_p0 = pneg %p1207_p11 }
  0x36   : > { %p977_p13 = scmp.ne.s32.totalorder %s1205_s29, %s976_s8  ;;  %s981_s12 = scalar_lea.hbm %s1326_s0, 256 }
  0x37   : > { %p982_p1 = scmp.lt.s32.totalorder %s1205_s29, %s1326_s0  ;;  %p983_p2 = scmp.lt.s32.totalorder %s981_s12, %s976_s8 }
  0x38   : > { %p979_p5 = pnand %p978_p0, %p977_p13 }
  0x39   : > { %p984_p6 = por %p983_p2, %p982_p1 }
  0x3a   : > { %p980_p10 = pneg %p979_p5 }
  0x3c   : > { %p985_p12 = pnand %p984_p6, %p980_p10 }
  0x3e   : > { %988 = shalt.err (!%p985_p12)
}
  0x3f   : > { %s989_s26 = scalar_lea.vmem %s195_s5, 128  ;;  %s1078_s24 = smov [#allocation2]  }
  0x40   : > { %p990_p7 = scmp.ne.s32.totalorder %s195_s5, %s989_s26  ;;  %s994_s27 = sshll.u32 %s1078_s24, 4  ;;  %s995_s27 = int_to_ptr.vmem [resolvable:$false] %s994_s27 }
  0x41   : > { %s996_s28 = scalar_lea.vmem %s995_s27, 256  ;;  %p997_p13 = scmp.lt.s32.totalorder %s195_s5, %s995_s27 }
  0x42   : > { %p992_p9 = pnand %p990_p7, %p978_p0  ;;  %p998_p5 = scmp.lt.s32.totalorder %s996_s28, %s989_s26 }
  0x44   : > { %p993_p3 = pneg %p992_p9  ;;  %p999_p4 = por %p998_p5, %p997_p13 }
  0x46   : > { %p1000_p8 = pnand %p999_p4, %p993_p3 }
  0x48   : > { %1003 = shalt.err (!%p1000_p8)
}
  0x49   : > { %860 = dma.hbm_to_vmem [thread:$0]  (!%p1207_p11), %s1205_s29, 128, %s195_s5, %s184_s7  }
  0x4a   : > { %p1342_p10 = scmp.ne.s32.totalorder %s1337_s23, 0 }
  0x4b   : > { %s1228_s30 = sand.u32 (!%p1342_p10), 1, %s1064_s16   ;;  %p1343_p4 = scmp.ne.s32.totalorder (!%p1342_p10), %s1335_s21, 0 }
  0x4c   : > { %203 = sbr.rel (%p1342_p10) target bundleno = 1441 (0x5a1), region = 36  ;;  %s759_s8 = sshll.u32 (!%p1342_p10), %s1228_s30, 3 }
  0x4d   : > { %s206_s9 = scalar_lea.sflag (!%p1342_p10), [#allocation3], %s1228_s30  ;;  %s209_s10 = scalar_lea.vmem (!%p1342_p10), [#allocation2], %s759_s8 }
  0x51   : > { %1047 = dma.done.wait (%p1343_p4), %s206_s9, 128  }
  0x52   : > { %1049 = vsyncadd (%p1343_p4), %s206_s9, 4294967168  ;;  %p1344_p8 = scmp.eq.s32.totalorder %s1131_s19, 0 }
  0x54   : > { %1051 = dma.done.wait (%p1344_p8), [#allocation6], 512   ;;  %p1345_p3 = pmov %p1344_p8 }
  0x55   : > { %v1079_v0 = vmov 0.0   ;;  %vm1080_vm0 = vmmov 0   ;;  %v912_v1 = vld [vmem:[#allocation5 + $0x8] sm:$0xff]   ;;  %v913_v2 = vld [vmem:[#allocation5] sm:$0xff]   ;;  %v243_v3 = vld [vmem:[%s209_s10] sm:$0xff]  ;;  %vm261_vm1 = vcmask 261120  }
  0x56   : > { %1053 = vsyncadd (%p1345_p3), [#allocation6], 4294966784  ;;  %794 = vmatprep.subr.bf16.mxu0 %v1079_v0  ;;  %798 = vmatprep.mubr.msk.bf16.mxu0 %vm1080_vm0, %v1079_v0  ;;  %v244_v4 = vpack.c.bf16 %v243_v3, %v243_v3  ;;  %s1081_s21 = smov 112   ;;  %s1082_s23 = smov 96   ;;  %vm314_vm2 = vcmask 130048   ;;  %vm410_vm3 = vcmask 64512  }
  0x57   : > { %802 = vmatprep.subr.bf16.mxu1 %v1079_v0  ;;  %804 = vmatprep.mubr.msk.bf16.mxu1 %vm1080_vm0, %v1079_v0  ;;  %s1083_s29 = smov 64   ;;  %vm440_vm4 = vcmask 1043456   ;;  %v914_v42 = vld [vmem:[#allocation7] sm:$0xff]   ;;  %v915_v48 = vld [vmem:[#allocation7 + $0x8] sm:$0xff]   ;;  %s776_s7 = sshll.u32 %s1131_s19, 7 }
  0x58   : > { %795 = vmatpush3.bf16.msra.mxu0 %v912_v1  ;;  %v774_v3 = vld [vmem:[%s1329_s3] ss:$0 sm:$0xff]  ;;  %s241_s12 = scalar_lea.vmem [#allocation8], %s759_s8  ;;  %s1288_s24 = scalar_lea.hbm %s1330_s4, %s776_s7 }
  0x59   : > { %796 = vmatprep.subr.bf16.mxu0 %v1079_v0  ;;  %s662_s13 = sshll.u32 %s241_s12, 4  ;;  %s649_s27 = scalar_lea.sflag [#allocation4], %s1228_s30  ;;  %s663_s13 = int_to_ptr.vmem [resolvable:$true] %s662_s13 }
  0x5a   : > { %s1004_s28 = scalar_lea.vmem %s663_s13, 128  ;;  %p1346_p0 = scmp.ne.s32.totalorder %s1340_s14, 0 }
  0x5b   : > { %p1005_p11 = scmp.ne.s32.totalorder %s663_s13, %s1004_s28  ;;  %s1084_s19 = smov [#allocation8]  }
  0x5c   : > { %797 = vmatpush3.bf16.msra.mxu0 %v913_v2  ;;  %s1008_s8 = sshll.u32 %s1084_s19, 4  ;;  %s1009_s8 = int_to_ptr.vmem [resolvable:$false] %s1008_s8 }
  0x5d   : > { %808 = vmatprep.subr.bf16.mxu0 %v1079_v0  ;;  %p1006_p1 = pnand %p1005_p11, %p1346_p0  ;;  %s1010_s9 = scalar_lea.vmem %s1009_s8, 256 }
  0x5e   : > { %p1011_p6 = scmp.lt.s32.totalorder %s663_s13, %s1009_s8  ;;  %p1012_p12 = scmp.lt.s32.totalorder %s1010_s9, %s1004_s28 }
  0x5f   : > { %799 = vmatmul.mubr.msk.bf16.vlgmr.msra.gmra.mxu0 %vm261_vm1, %v244_v4  ;;  %p1007_p2 = pneg %p1006_p1 }
  0x60   : > { %810 = vmatprep.mubr.msk.bf16.mxu0 %vm1080_vm0, %v1079_v0  ;;  %p1013_p7 = por %p1012_p12, %p1011_p6 }
  0x62   : > { %p1014_p9 = pnand %p1013_p7, %p1007_p2 }
 0x11f   : > { %v299_v5 = vpop.f32.mrf.mxu0 }
 0x120   : > { %306 = vrot.lane.b32.xlu0 %v299_v5, %s1081_s21  ;;  %v309_v7 = vpack.c.bf16 %v299_v5, %v299_v5 }
 0x121   : > { %v800_v6 = vpop.f32.mrf.mxu0 }
 0x123   : > { %v302_v8 = vpop.f32.mrf.mxu0 }
 0x124   : > { %312 = vrot.lane.b32.xlu0 %v309_v7, %s1082_s23 }
 0x125   : > { %v801_v9 = vpop.f32.mrf.mxu0 }
 0x192   : > { %v307_v10 = vpop.permute.xlu0 %306 }
 0x193   : > { %v310_v11 = vpack.c.bf16 %v307_v10, %v307_v10 }
 0x195   : > { %362 = vrot.lane.b32.xlu1 %v310_v11, %s1082_s23 }
 0x196   : > { %v313_v12 = vpop.permute.xlu0 %312 }
 0x197   : > { %v319_v13 = vsel %vm314_vm2, %v313_v12, 0 }
 0x198   : > { %803 = vmatpush3.bf16.xpose.msra.mxu1 %v319_v13 }
 0x199   : > { %814 = vmatprep.subr.bf16.mxu1 %v1079_v0 }
 0x19f   : > { %805 = vmatmul.mubr.msk.bf16.vlgmr.msra.gmra.mxu1 %vm314_vm2, %v309_v7 }
 0x1a0   : > { %816 = vmatprep.mubr.msk.bf16.mxu1 %vm1080_vm0, %v1079_v0 }
 0x207   : > { %v363_v14 = vpop.permute.xlu1 %362 }
 0x208   : > { %v368_v15 = vsel %vm314_vm2, %v363_v14, 0 }
 0x209   : > { %809 = vmatpush3.bf16.xpose.msra.mxu0 %v368_v15 }
 0x20a   : > { %820 = vmatprep.subr.bf16.mxu0 %v1079_v0 }
 0x210   : > { %811 = vmatmul.mubr.msk.bf16.vlgmr.msra.gmra.mxu0 %vm314_vm2, %v310_v11 }
 0x211   : > { %822 = vmatprep.mubr.msk.bf16.mxu0 %vm1080_vm0, %v1079_v0 }
 0x25f   : > { %v355_v16 = vpop.f32.mrf.mxu1 }
 0x260   : > { %v411_v17 = vsel %vm410_vm3, %v355_v16, -inf }
 0x261   : > { %412 = vmax.xlane.f32.xlu1 %v411_v17  ;;  %v806_v18 = vpop.f32.mrf.mxu1 }
 0x263   : > { %v358_v19 = vpop.f32.mrf.mxu1 }
 0x265   : > { %v807_v20 = vpop.f32.mrf.mxu1 }
 0x2d0   : > { %v404_v21 = vpop.f32.mrf.mxu0 }
 0x2d1   : > { %v414_v22 = vsel %vm410_vm3, %v404_v21, -inf }
 0x2d2   : > { %415 = vmax.xlane.f32.xlu0 %v414_v22  ;;  %v812_v23 = vpop.f32.mrf.mxu0 }
 0x2d4   : > { %v407_v24 = vpop.f32.mrf.mxu0 }
 0x2d6   : > { %v813_v25 = vpop.f32.mrf.mxu0 }
 0x2ea   : > { %v413_v26 = vpop.xlane.xlu1 %412 }
 0x2eb   : > { %v417_v27 = vsub.f32 %v355_v16, %v413_v26 }
 0x2ed   : > { %v419_v28 = vmul.f32 1.442695, %v417_v27 }
 0x2ef   : > { %916 = vpow2.f32 %v419_v28 }
 0x2fc   : > { %v917_v29 = vpop.eup %916 }
 0x2fd   : > { %v423_v30 = vsel %vm410_vm3, %v917_v29, 0.0 }
 0x2fe   : > { %424 = vadd.xlane.f32.xlu0 %v423_v30 }
 0x314   : > { %435 = vrot.lane.b32.xlu0 %v309_v7, %s1083_s29 }
 0x35b   : > { %v416_v31 = vpop.xlane.xlu0 %415 }
 0x35c   : > { %v418_v32 = vsub.f32 %v404_v21, %v416_v31 }
 0x35e   : > { %v421_v33 = vmul.f32 1.442695, %v418_v32 }
 0x360   : > { %918 = vpow2.f32 %v421_v33 }
 0x36d   : > { %v919_v34 = vpop.eup %918 }
 0x36e   : > { %v426_v35 = vsel %vm410_vm3, %v919_v34, 0.0 }
 0x36f   : > { %427 = vadd.xlane.f32.xlu1 %v426_v35 }
 0x380   : > { %484 = vrot.lane.b32.xlu1 %v310_v11, %s1083_s29 }
 0x387   : > { %v425_v36 = vpop.xlane.xlu0 %424 }
 0x388   : > { %920 = vrcp.f32 %v425_v36 }
 0x38b   : > { %v436_v37 = vpop.permute.xlu0 %435 }
 0x38c   : > { %v442_v38 = vsel %vm440_vm4, %v436_v37, 0 }
 0x38d   : > { %815 = vmatpush3.bf16.msra.mxu1 %v442_v38 }
 0x38e   : > { %826 = vmatprep.subr.bf16.mxu1 %v1079_v0 }
 0x395   : > { %v921_v39 = vpop.eup %920 }
 0x396   : > { %v431_v40 = vmul.f32 %v921_v39, %v917_v29 }
 0x398   : > { %v433_v41 = vpack.c.bf16 %v431_v40, %v431_v40 }
 0x39a   : > { %817 = vmatmul.mubr.msk.bf16.vlgmr.msra.gmra.mxu1 %vm410_vm3, %v433_v41 }
 0x39b   : > { %828 = vmatprep.mubr.msk.bf16.mxu1 %vm1080_vm0, %v1079_v0  ;;  %827 = vmatpush3.bf16.msra.mxu1 %v914_v42 }
 0x3f8   : > { %v428_v43 = vpop.xlane.xlu1 %427 }
 0x3f9   : > { %922 = vrcp.f32 %v428_v43 }
 0x3fc   : > { %v485_v44 = vpop.permute.xlu1 %484 }
 0x3fd   : > { %v490_v45 = vsel %vm440_vm4, %v485_v44, 0 }
 0x3fe   : > { %821 = vmatpush3.bf16.msra.mxu0 %v490_v45 }
 0x3ff   : > { %832 = vmatprep.subr.bf16.mxu0 %v1079_v0 }
 0x406   : > { %v923_v46 = vpop.eup %922 }
 0x407   : > { %v432_v47 = vmul.f32 %v923_v46, %v919_v34 }
 0x409   : > { %v434_v49 = vpack.c.bf16 %v432_v47, %v432_v47 }
 0x40b   : > { %823 = vmatmul.mubr.msk.bf16.vlgmr.msra.gmra.mxu0 %vm410_vm3, %v434_v49 }
 0x40c   : > { %833 = vmatpush3.bf16.msra.mxu0 %v915_v48  ;;  %834 = vmatprep.mubr.msk.bf16.mxu0 %vm1080_vm0, %v1079_v0 }
 0x45a   : > { %v478_v50 = vpop.f32.mrf.mxu1 }
 0x45b   : > { %v532_v51 = vpack.c.bf16 %v478_v50, %v478_v50 }
 0x45c   : > { %v818_v52 = vpop.f32.mrf.mxu1 }
 0x45d   : > { %829 = vmatmul.mubr.msk.bf16.vlgmr.msra.gmra.mxu1 %vm314_vm2, %v532_v51 }
 0x45e   : > { %v481_v53 = vpop.f32.mrf.mxu1 }
 0x460   : > { %v819_v54 = vpop.f32.mrf.mxu1 }
 0x4cb   : > { %v526_v55 = vpop.f32.mrf.mxu0 }
 0x4cc   : > { %v533_v56 = vpack.c.bf16 %v526_v55, %v526_v55 }
 0x4cd   : > { %v824_v57 = vpop.f32.mrf.mxu0 }
 0x4ce   : > { %835 = vmatmul.mubr.msk.bf16.vlgmr.msra.gmra.mxu0 %vm314_vm2, %v533_v56 }
 0x4cf   : > { %v529_v58 = vpop.f32.mrf.mxu0 }
 0x4d1   : > { %v825_v59 = vpop.f32.mrf.mxu0 }
 0x51d   : > { %v581_v60 = vpop.f32.mrf.mxu1 }
 0x51e   : > { %v636_v1 = vsel %vm261_vm1, %v581_v60, 0.0 }
 0x51f   : > { %v830_v61 = vpop.f32.mrf.mxu1 }
 0x521   : > { %v584_v62 = vpop.f32.mrf.mxu1 }
 0x523   : > { %v831_v63 = vpop.f32.mrf.mxu1 }
 0x58e   : > { %v630_v0 = vpop.f32.mrf.mxu0 }
 0x58f   : > { %v637_v2 = vsel %vm261_vm1, %v630_v0, 0.0 }
 0x590   : > { %v638_v4 = vadd.f32 %v637_v2, %v636_v1  ;;  %v836_v5 = vpop.f32.mrf.mxu0 }
 0x592   : > { %v646_v6 = vadd.f32 %v774_v3, %v638_v4  ;;  %v633_v7 = vpop.f32.mrf.mxu0 }
 0x594   : > { %v837_v8 = vpop.f32.mrf.mxu0  ;;  %647 = vst.msk [vmem:[%s241_s12] sm:$0xff] %vm261_vm1, %v646_v6 }
 0x595   : > { %1017 = shalt.err (!%p1014_p9)
}
 0x596   : > { %s1018_s10 = scalar_lea.hbm %s1288_s24, 128  ;;  %s1022_s23 = scalar_lea.hbm %s1330_s4, 256 }
 0x597   : > { %p1019_p13 = scmp.ne.s32.totalorder %s1288_s24, %s1018_s10  ;;  %p1023_p4 = scmp.lt.s32.totalorder %s1288_s24, %s1330_s4 }
 0x598   : > { %p1024_p8 = scmp.lt.s32.totalorder %s1022_s23, %s1018_s10 }
 0x599   : > { %p1020_p5 = pnand %p1019_p13, %p1346_p0 }
 0x59a   : > { %p1025_p3 = por %p1024_p8, %p1023_p4 }
 0x59b   : > { %p1021_p10 = pneg %p1020_p5 }
 0x59d   : > { %p1026_p11 = pnand %p1025_p3, %p1021_p10 }
 0x59f   : > { %1029 = shalt.err (!%p1026_p11)
}
 0x5a0   : > { %848 = dma.vmem_to_hbm [thread:$0]  (%p1346_p0), %s663_s13, 128, %s1288_s24, %s649_s27  }
 0x5a1 PF: > { %s674_s6 = sand.u32 1, %s1060_s15   ;;  %p1347_p1 = scmp.ne.s32.totalorder %s1336_s22, 0 }
 0x5a2   : > { %p1348_p2 = scmp.ge.s32.totalorder %s1072_s18, 2  ;;  %s675_s7 = scalar_lea.sflag [#allocation4], %s674_s6 }
 0x5a4   : > { %p862_p6 = pnand %p1348_p2, %p1347_p1 }
 0x5a6   : > { %p863_p12 = pneg %p862_p6 }
 0x5a8   : > { %1055 = dma.done.wait (%p863_p12), %s675_s7, 128  }
 0x5a9   : > { %1057 = vsyncadd (%p863_p12), %s675_s7, 4294967168  ;;  %p18_p7 = scmp.ge.s32.totalorder %s1182_s11, 4   ;;  %s1349_s15 = smov %s1064_s16 }
 0x5aa   : > { %s1350_s16 = smov %s1068_s17  ;;  %s1351_s17 = smov %s1198_s20 }
 0x5ab   : > { %s1352_s18 = smov %s1182_s11  ;;  %20 = sbr.rel (!%p18_p7) target bundleno = 6 (0x6), region = 89 }
 0x5b0   :  { %680 = vsyncpa [#allocation3], 1 }
 0x5b1   :  { %682 = vsyncpa [#allocation3 + $0x1], 1 }
 0x5b2   :  { %683 = vsyncpa [#allocation6], 1 }
 0x5b3   :  { %684 = vsyncpa [#allocation4], 1 }
 0x5b4   :  { %686 = vsyncpa [#allocation4 + $0x1], 1 }

</bundles_post_ra>
